<compile_context>
chip_gen: v7x
topology: tpu7x:2x2x1
jax: 0.10.0
libtpu: 0.0.40
codegen_flags: <defaults>
</compile_context>

<pallas_src>
import jax
import jax.numpy as jnp
from jax.experimental import pallas as pl
from jax.experimental.pallas import tpu as pltpu


# ---------------------------------------------------------------------------
# Layout / VMEM budgeting helpers (padding-aware: (8, 128) f32 tiling)
# ---------------------------------------------------------------------------
def _rup(x, m):
    return -(-x // m) * m


def _lane(c):                      # last-dim (lane) padding
    return _rup(c, 128)


def _rsub(m):                      # second-to-last-dim (sublane) padding
    return _rup(m, 8)


def _vmem_limit_bytes():
    """Per-generation VMEM limit: ~3/4 of physical, capped at 96 MiB.

    v7x (64 MiB physical) -> 48 MiB; v5e/v6e (128 MiB) -> 96 MiB.  Falls back
    to a conservative 48 MiB if the hardware query is unavailable.
    """
    cap = 64 * 1024 * 1024
    try:
        info = pltpu.get_tpu_info()
        c = getattr(info, "vmem_capacity_bytes", None)
        if c:
            cap = int(c)
    except Exception:
        pass
    return max(min(cap * 3 // 4, 96 * 1024 * 1024), 32 * 1024 * 1024)


def _pick_tile_n(n, per_voxel_bytes, budget_bytes):
    """Largest multiple-of-8 voxel tile fitting the (padding-aware) budget.

    Also keeps at least 2 grid steps when possible so the voxel axis can be
    sharded across v7x's two TensorCores and double-buffering can overlap.
    """
    t = budget_bytes // max(int(per_voxel_bytes), 1)
    t = max(8, (t // 8) * 8)
    half = max(8, _rup(-(-n // 2), 8))
    return min(t, half)


def _fused_per_voxel_bytes(mp, cin, c1, c2, pointwise_out):
    """Padded f32 bytes per voxel for one grid step of the fused kernel."""
    b = 2 * mp * _lane(cin)              # input block, double-buffered
    b += mp * _lane(cin)                 # x2 load / reshape
    b += mp * _lane(c1)                  # pw
    b += mp * _lane(c2)                  # pw @ W2_pw
    if pointwise_out:
        b += 3 * mp * _lane(c2)          # output block (x2 buffers) + relu temp
        b += _lane(c1) + _lane(c2)       # mx, mx_term
    else:
        b += _lane(c1) + 4 * _lane(c2)   # mx, mx_term, pw_max, output (x2)
    return 4 * b


def _layer_per_voxel_bytes(mp, cin, cout, max_out, cat_max):
    b = 2 * mp * _lane(cin) + mp * _lane(cin)
    b += mp * _lane(cout)
    if max_out and cat_max:
        b += 3 * mp * _lane(2 * cout) + _lane(cout)
    elif max_out:
        b += 3 * _lane(cout)
    else:
        b += 3 * mp * _lane(cout)
    return 4 * b


# ---------------------------------------------------------------------------
# Parameter folding / input padding helpers
# ---------------------------------------------------------------------------
def _fold_bn(weight, gamma, beta, running_mean, running_var, eps):
    """Fold eval-mode BatchNorm1d into the linear weight + per-channel shift."""
    w = weight.astype(jnp.float32)                           # (Cout, Cin)
    inv_std = 1.0 / jnp.sqrt(running_var.astype(jnp.float32) + eps)
    scale = gamma.astype(jnp.float32) * inv_std              # (Cout,)
    shift = beta.astype(jnp.float32) - running_mean.astype(jnp.float32) * scale
    w_folded = (w * scale[:, None]).T                        # (Cin, Cout)
    return w_folded, shift.reshape(1, -1)                    # shift: (1, Cout)


def _pad_points(x):
    """Edge-replicate the points dim up to a multiple of 8 (f32 sublane pack).

    Replication (not zero padding) keeps every per-voxel max exact without any
    in-kernel masking, and keeps the in-kernel reshapes relayout-free.
    """
    m = x.shape[1]
    m_pad = (-m) % 8
    if m_pad:
        x = jnp.pad(x, ((0, 0), (0, m_pad), (0, 0)), mode="edge")
    return x, x.shape[1]


def _pad_voxels_to_grid(x, tile_n):
    """Zero-pad the voxel dim so the grid has an even (>= 2) number of steps."""
    n = x.shape[0]
    steps = -(-n // tile_n)
    if steps % 2:                       # even step count keeps both v7x TCs busy
        steps += 1
    np_tot = steps * tile_n
    if np_tot != n:
        pad = [(0, np_tot - n)] + [(0, 0)] * (x.ndim - 1)
        x = jnp.pad(x, pad)
    return x, steps


# ---------------------------------------------------------------------------
# Fused 2-layer kernels (catmax layer followed by maxout / pointwise layer)
# ---------------------------------------------------------------------------
def _vfe_fused2_maxout_kernel(x_ref, w1_ref, b1_ref, w2pw_ref, w2mx_ref,
                              b2_ref, o_ref):
    # x: (tn, Mp, Cin)  w1: (Cin, C1)  b1: (1, C1)
    # w2pw/w2mx: (C1, C2)  b2: (1, C2)  o: (tn, C2)
    tn, mp, cin = x_ref.shape
    c1 = w1_ref.shape[1]
    c2 = w2pw_ref.shape[1]

    x2 = x_ref[...].reshape(tn * mp, cin)
    # Layer 1 (BN scale folded into w1): Linear + shift + ReLU.
    pw = jnp.maximum(
        jnp.dot(x2, w1_ref[...], preferred_element_type=jnp.float32) + b1_ref[...],
        0.0)                                                  # (tn*mp, c1)
    mx = jnp.max(pw.reshape(tn, mp, c1), axis=1)              # (tn, c1)

    # Layer 2 on concat([pw, max]) with the split weight.  The "max half" is
    # constant per voxel and ReLU/max commute with adding a per-voxel constant:
    #   max_m relu(pw_m @ W2pw + mx @ W2mx + b2)
    #     == relu(max_m(pw_m @ W2pw) + mx @ W2mx + b2)
    # so the big matmul runs once per point and the rest once per voxel.
    y_pw = jnp.dot(pw, w2pw_ref[...], preferred_element_type=jnp.float32)
    pw_max = jnp.max(y_pw.reshape(tn, mp, c2), axis=1)        # (tn, c2)
    mx_term = (jnp.dot(mx, w2mx_ref[...], preferred_element_type=jnp.float32)
               + b2_ref[...])                                 # (tn, c2)
    o_ref[...] = jnp.maximum(pw_max + mx_term, 0.0)


def _vfe_fused2_pointwise_kernel(x_ref, w1_ref, b1_ref, w2pw_ref, w2mx_ref,
                                 b2_ref, o_ref):
    # Same as above, but the last layer keeps per-point outputs
    # (fusion_layer config: max_out=False).  o: (tn, Mp, C2)
    tn, mp, cin = x_ref.shape
    c1 = w1_ref.shape[1]
    c2 = w2pw_ref.shape[1]

    x2 = x_ref[...].reshape(tn * mp, cin)
    pw = jnp.maximum(
        jnp.dot(x2, w1_ref[...], preferred_element_type=jnp.float32) + b1_ref[...],
        0.0)
    mx = jnp.max(pw.reshape(tn, mp, c1), axis=1)              # (tn, c1)
    mx_term = (jnp.dot(mx, w2mx_ref[...], preferred_element_type=jnp.float32)
               + b2_ref[...])                                 # (tn, c2), once per voxel
    y_pw = jnp.dot(pw, w2pw_ref[...], preferred_element_type=jnp.float32)
    y = y_pw.reshape(tn, mp, c2) + mx_term[:, None, :]
    o_ref[...] = jnp.maximum(y, 0.0)


def vfe_fused2_apply(x, p1, p2, *, tile_n=None, input_dtype=None):
    N, M, Cin = x.shape
    C1 = p1["weight"].shape[0]
    C2 = p2["weight"].shape[0]
    assert p1["weight"].shape[1] == Cin
    assert p2["weight"].shape[1] == 2 * C1
    pointwise_out = not p2["max_out"]          # fusion_layer variant

    w1, b1 = _fold_bn(p1["weight"], p1["gamma"], p1["beta"],
                      p1["running_mean"], p1["running_var"], p1["eps"])
    w2, b2 = _fold_bn(p2["weight"], p2["gamma"], p2["beta"],
                      p2["running_mean"], p2["running_var"], p2["eps"])
    w2_pw = w2[:C1]      # rows acting on the pointwise half of the concat
    w2_mx = w2[C1:]      # rows acting on the broadcast per-voxel max

    x = x.astype(jnp.float32)
    x, Mp = _pad_points(x)

    # Opt-in bf16 streaming of the dominant HBM read (most valuable on the
    # firmly memory-bound v5e); matmuls still accumulate f32.
    if input_dtype is not None and input_dtype != jnp.float32:
        x = x.astype(input_dtype)
        w1 = w1.astype(input_dtype)
        w2_pw = w2_pw.astype(input_dtype)
        w2_mx = w2_mx.astype(input_dtype)

    vmem_limit = _vmem_limit_bytes()
    per_voxel = _fused_per_voxel_bytes(Mp, Cin, C1, C2, pointwise_out)
    fixed = 2 * 4 * (_rsub(Cin) * _lane(C1) + 2 * _rsub(C1) * _lane(C2)
                     + 2 * 8 * _lane(max(C1, C2)))
    budget = max(vmem_limit - fixed - 4 * 1024 * 1024, 1 * 1024 * 1024)
    if tile_n is None:
        tile_n = _pick_tile_n(N, per_voxel, budget)

    x, steps = _pad_voxels_to_grid(x, tile_n)
    Np = x.shape[0]
    grid = (steps,)

    itemsize = jnp.dtype(x.dtype).itemsize
    flops = 2 * Np * Mp * (Cin * C1 + C1 * C2) + 2 * Np * C1 * C2
    out_elems = Np * Mp * C2 if pointwise_out else Np * C2
    bytes_accessed = (itemsize * Np * Mp * Cin + 4 * out_elems
                      + 4 * (Cin * C1 + 2 * C1 * C2 + C1 + C2))

    if pointwise_out:
        kernel = _vfe_fused2_pointwise_kernel
        out_shape = jax.ShapeDtypeStruct((Np, Mp, C2), jnp.float32)
        out_spec = pl.BlockSpec((tile_n, Mp, C2), lambda i: (i, 0, 0))
    else:
        kernel = _vfe_fused2_maxout_kernel
        out_shape = jax.ShapeDtypeStruct((Np, C2), jnp.float32)
        out_spec = pl.BlockSpec((tile_n, C2), lambda i: (i, 0))

    out = pl.pallas_call(
        kernel,
        grid=grid,
        in_specs=[
            pl.BlockSpec((tile_n, Mp, Cin), lambda i: (i, 0, 0)),
            pl.BlockSpec((Cin, C1), lambda i: (0, 0)),
            pl.BlockSpec((1, C1), lambda i: (0, 0)),
            pl.BlockSpec((C1, C2), lambda i: (0, 0)),
            pl.BlockSpec((C1, C2), lambda i: (0, 0)),
            pl.BlockSpec((1, C2), lambda i: (0, 0)),
        ],
        out_specs=out_spec,
        out_shape=out_shape,
        compiler_params=pltpu.CompilerParams(
            dimension_semantics=("parallel",),
            vmem_limit_bytes=vmem_limit),
        cost_estimate=pl.CostEstimate(flops=flops, transcendentals=0,
                                      bytes_accessed=bytes_accessed),
    )(x, w1, b1, w2_pw, w2_mx, b2)

    if pointwise_out:
        return out[:N, :M]
    return out[:N]


# ---------------------------------------------------------------------------
# Generic per-layer kernels (fallback for non-standard configs, e.g. 3+ layers)
# ---------------------------------------------------------------------------
def _vfe_layer_catmax_kernel(x_ref, w_ref, b_ref, o_ref):
    tn, mp, cin = x_ref.shape
    cout = w_ref.shape[1]
    y = jnp.dot(x_ref[...].reshape(tn * mp, cin), w_ref[...],
                preferred_element_type=jnp.float32) + b_ref[...]
    pw = jnp.maximum(y, 0.0).reshape(tn, mp, cout)
    agg = jnp.max(pw, axis=1, keepdims=True)
    o_ref[...] = jnp.concatenate([pw, jnp.broadcast_to(agg, pw.shape)], axis=2)


def _vfe_layer_maxout_kernel(x_ref, w_ref, b_ref, o_ref):
    tn, mp, cin = x_ref.shape
    cout = w_ref.shape[1]
    y = jnp.dot(x_ref[...].reshape(tn * mp, cin), w_ref[...],
                preferred_element_type=jnp.float32) + b_ref[...]
    pw = jnp.maximum(y, 0.0).reshape(tn, mp, cout)
    o_ref[...] = jnp.max(pw, axis=1)


def _vfe_layer_pointwise_kernel(x_ref, w_ref, b_ref, o_ref):
    tn, mp, cin = x_ref.shape
    cout = w_ref.shape[1]
    y = jnp.dot(x_ref[...].reshape(tn * mp, cin), w_ref[...],
                preferred_element_type=jnp.float32) + b_ref[...]
    o_ref[...] = jnp.maximum(y, 0.0).reshape(tn, mp, cout)


def vfe_layer_apply(x, weight, gamma, beta, running_mean, running_var, *,
                    eps=1e-3, max_out=True, cat_max=True, tile_n=None):
    N, M, Cin = x.shape
    Cout = weight.shape[0]
    assert weight.shape[1] == Cin
    w, shift = _fold_bn(weight, gamma, beta, running_mean, running_var, eps)

    x = x.astype(jnp.float32)
    x, Mp = _pad_points(x)

    if max_out and cat_max:
        kernel = _vfe_layer_catmax_kernel
        out_tail = (Mp, 2 * Cout)
    elif max_out:
        kernel = _vfe_layer_maxout_kernel
        out_tail = (Cout,)
    else:
        kernel = _vfe_layer_pointwise_kernel
        out_tail = (Mp, Cout)

    vmem_limit = _vmem_limit_bytes()
    per_voxel = _layer_per_voxel_bytes(Mp, Cin, Cout, max_out, cat_max)
    fixed = 2 * 4 * (_rsub(Cin) * _lane(Cout) + 8 * _lane(Cout))
    budget = max(vmem_limit - fixed - 4 * 1024 * 1024, 1 * 1024 * 1024)
    if tile_n is None:
        tile_n = _pick_tile_n(N, per_voxel, budget)

    x, steps = _pad_voxels_to_grid(x, tile_n)
    Np = x.shape[0]
    grid = (steps,)

    if len(out_tail) == 2:
        out_spec = pl.BlockSpec((tile_n,) + out_tail, lambda i: (i, 0, 0))
        out_elems = out_tail[0] * out_tail[1]
    else:
        out_spec = pl.BlockSpec((tile_n,) + out_tail, lambda i: (i, 0))
        out_elems = out_tail[0]

    flops = 2 * Np * Mp * Cin * Cout
    bytes_accessed = 4 * (Np * Mp * Cin + Np * out_elems + Cin * Cout + Cout)

    out = pl.pallas_call(
        kernel,
        grid=grid,
        in_specs=[
            pl.BlockSpec((tile_n, Mp, Cin), lambda i: (i, 0, 0)),
            pl.BlockSpec((Cin, Cout), lambda i: (0, 0)),
            pl.BlockSpec((1, Cout), lambda i: (0, 0)),
        ],
        out_specs=out_spec,
        out_shape=jax.ShapeDtypeStruct((Np,) + out_tail, jnp.float32),
        compiler_params=pltpu.CompilerParams(
            dimension_semantics=("parallel",),
            vmem_limit_bytes=vmem_limit),
        cost_estimate=pl.CostEstimate(flops=flops, transcendentals=0,
                                      bytes_accessed=bytes_accessed),
    )(x, w, shift)

    out = out[:N]
    if len(out_tail) == 2 and Mp != M:
        out = out[:, :M]
    return out


# ---------------------------------------------------------------------------
# Forward pass (mirrors VFE.forward)
# ---------------------------------------------------------------------------
def _fusable_pair(params):
    # Any 2-layer VFE whose first layer is the catmax layer: covers both the
    # standard PointPillars config (last layer maxout) and the fusion_layer
    # variant (last layer pointwise).
    return (len(params) == 2
            and params[0]["max_out"] and params[0]["cat_max"]
            and not params[1]["cat_max"])


def vfe_forward(voxel_feats, params, *, tile_n=None, input_dtype=None):
    x = voxel_feats.astype(jnp.float32)            # @force_fp32 on the input
    if _fusable_pair(params):
        # Single fused kernel: no HBM intermediates, no concat materialization.
        return vfe_fused2_apply(x, params[0], params[1],
                                tile_n=tile_n, input_dtype=input_dtype)
    # Generic fallback: one pallas_call per VFELayer.
    # TODO(synk): for >2-layer chains the concat's broadcast-max half is still
    # written to HBM; splitting it into (pointwise, aggregated) outputs like
    # the fused path would halve that intermediate traffic.
    for p in params:
        x = vfe_layer_apply(x, p["weight"], p["gamma"], p["beta"],
                            p["running_mean"], p["running_var"],
                            eps=p["eps"], max_out=p["max_out"],
                            cat_max=p["cat_max"], tile_n=tile_n)
    return x


# ---------------------------------------------------------------------------
# Parameter construction mirroring VFE.__init__ (deterministic, synthetic)
# ---------------------------------------------------------------------------
def init_vfe_params(key, in_channels, feat_channels, *, eps=1e-3,
                    fusion_layer=False):
    feat_channels_full = [in_channels] + list(feat_channels)
    params = []
    for i in range(len(feat_channels_full) - 1):
        in_filters = feat_channels_full[i]
        out_filters = feat_channels_full[i + 1]
        if i > 0:
            in_filters *= 2
        if i == len(feat_channels_full) - 2:
            cat_max = False
            max_out = True
            if fusion_layer:
                max_out = False
        else:
            max_out = True
            cat_max = True
        key, kw, kg, kb, km, kv = jax.random.split(key, 6)
        params.append(dict(
            weight=0.1 * jax.random.normal(kw, (out_filters, in_filters), jnp.float32),
            gamma=1.0 + 0.1 * jax.random.normal(kg, (out_filters,), jnp.float32),
            beta=0.1 * jax.random.normal(kb, (out_filters,), jnp.float32),
            running_mean=0.1 * jax.random.normal(km, (out_filters,), jnp.float32),
            running_var=0.5 + jnp.abs(jax.random.normal(kv, (out_filters,), jnp.float32)),
            eps=eps,
            max_out=max_out,
            cat_max=cat_max,
        ))
    return params


# ---------------------------------------------------------------------------
# Pure-JAX reference for verification
# ---------------------------------------------------------------------------
def vfe_forward_ref(voxel_feats, params):
    x = voxel_feats.astype(jnp.float32)
    for p in params:
        y = jnp.einsum("nmc,oc->nmo", x, p["weight"])
        inv_std = 1.0 / jnp.sqrt(p["running_var"] + p["eps"])
        y = (y - p["running_mean"]) * inv_std * p["gamma"] + p["beta"]
        pointwise = jnp.maximum(y, 0.0)
        if not p["max_out"]:
            x = pointwise
            continue
        aggregated = jnp.max(pointwise, axis=1, keepdims=True)
        if p["cat_max"]:
            x = jnp.concatenate(
                [pointwise, jnp.broadcast_to(aggregated, pointwise.shape)], axis=2)
        else:
            x = aggregated[:, 0, :]
    return x


if __name__ == "__main__":
    # PointPillars pts_voxel_encoder-like config:
    #   base in_channels=4, +3 cluster center, +3 voxel center, no distance -> 10
    base_in = 4
    in_channels = base_in + 3 + 3                     # = 10
    feat_channels = [32, 64]

    N, M = 32, 8                                      # voxels, points/voxel (small test)
    key = jax.random.PRNGKey(0)
    k_in, k_params, k_in2 = jax.random.split(key, 3)
    voxel_feats = jax.random.normal(k_in, (N, M, in_channels), dtype=jnp.float32)

    # 1) Standard config -> single fused kernel, output (N, 64).
    params = init_vfe_params(k_params, in_channels, feat_channels, eps=1e-3)
    out = jax.block_until_ready(vfe_forward(voxel_feats, params))
    ref = vfe_forward_ref(voxel_feats, params)
    assert out.shape == (N, feat_channels[-1]), out.shape
    assert jnp.allclose(out, ref, atol=1e-4, rtol=1e-4), \
        float(jnp.max(jnp.abs(out - ref)))

    # 2) fusion_layer config (last layer max_out=False) -> fused pointwise kernel.
    params_f = init_vfe_params(k_params, in_channels, feat_channels, eps=1e-3,
                               fusion_layer=True)
    out_f = jax.block_until_ready(vfe_forward(voxel_feats, params_f))
    ref_f = vfe_forward_ref(voxel_feats, params_f)
    assert out_f.shape == (N, M, feat_channels[-1]), out_f.shape
    assert jnp.allclose(out_f, ref_f, atol=1e-4, rtol=1e-4), \
        float(jnp.max(jnp.abs(out_f - ref_f)))

    # 3) Non-standard 3-layer config with odd M -> generic per-layer fallback,
    #    exercising the edge-replicated M padding and voxel-grid padding.
    N3, M3 = 20, 6
    voxel_feats3 = jax.random.normal(k_in2, (N3, M3, in_channels), dtype=jnp.float32)
    params3 = init_vfe_params(k_params, in_channels, [16, 16, 32], eps=1e-3)
    out3 = jax.block_until_ready(vfe_forward(voxel_feats3, params3))
    ref3 = vfe_forward_ref(voxel_feats3, params3)
    assert out3.shape == (N3, 32), out3.shape
    assert jnp.allclose(out3, ref3, atol=1e-4, rtol=1e-4), \
        float(jnp.max(jnp.abs(out3 - ref3)))

    print("KERNEL_OK")
</pallas_src>

<mosaic_0001>
module attributes {stable_mosaic.version = 11 : i64} {
  func.func @_vfe_fused2_maxout_kernel(%arg0: i32, %arg1: memref<16x8x10xf32, #tpu.memory_space<vmem>>, %arg2: memref<10x32xf32, #tpu.memory_space<vmem>>, %arg3: memref<1x32xf32, #tpu.memory_space<vmem>>, %arg4: memref<32x64xf32, #tpu.memory_space<vmem>>, %arg5: memref<32x64xf32, #tpu.memory_space<vmem>>, %arg6: memref<1x64xf32, #tpu.memory_space<vmem>>, %arg7: memref<16x64xf32, #tpu.memory_space<vmem>>) attributes {dimension_semantics = [#tpu.dimension_semantics<parallel>], iteration_bounds = array<i64: 2>, scalar_prefetch = 0 : i64, scratch_operands = 0 : i64, tpu.core_type = #tpu.core_type<tc>, window_params = [{transform_indices = @transform_0, window_bounds = array<i64: 16, 8, 10>}, {pipeline_mode = #tpu.pipeline_mode<synchronous>, transform_indices = @transform_1, window_bounds = array<i64: 10, 32>}, {pipeline_mode = #tpu.pipeline_mode<synchronous>, transform_indices = @transform_2, window_bounds = array<i64: 1, 32>}, {pipeline_mode = #tpu.pipeline_mode<synchronous>, transform_indices = @transform_3, window_bounds = array<i64: 32, 64>}, {pipeline_mode = #tpu.pipeline_mode<synchronous>, transform_indices = @transform_4, window_bounds = array<i64: 32, 64>}, {pipeline_mode = #tpu.pipeline_mode<synchronous>, transform_indices = @transform_5, window_bounds = array<i64: 1, 64>}, {transform_indices = @transform_6, window_bounds = array<i64: 16, 64>}]} {
    %c0 = arith.constant 0 : index
    %c0_0 = arith.constant 0 : index
    %c0_1 = arith.constant 0 : index
    %0 = vector.load %arg1[%c0, %c0_0, %c0_1] : memref<16x8x10xf32, #tpu.memory_space<vmem>>, vector<16x8x10xf32>
    %1 = vector.shape_cast %0 : vector<16x8x10xf32> to vector<128x10xf32>
    %c0_2 = arith.constant 0 : index
    %c0_3 = arith.constant 0 : index
    %2 = vector.load %arg2[%c0_2, %c0_3] : memref<10x32xf32, #tpu.memory_space<vmem>>, vector<10x32xf32>
    %cst = arith.constant dense<0.000000e+00> : vector<128x32xf32>
    %3 = tpu.matmul %1, %2, %cst {dimension_numbers = #tpu.dot_dimension_numbers<[1], [0], [0], [1], [0, 0, 1, 1], [], []>} : vector<128x10xf32>, vector<10x32xf32>, vector<128x32xf32> -> vector<128x32xf32>
    %c0_4 = arith.constant 0 : index
    %c0_5 = arith.constant 0 : index
    %4 = vector.load %arg3[%c0_4, %c0_5] : memref<1x32xf32, #tpu.memory_space<vmem>>, vector<1x32xf32>
    %5 = vector.broadcast %4 : vector<1x32xf32> to vector<128x32xf32>
    %6 = arith.addf %3, %5 : vector<128x32xf32>
    %cst_6 = arith.constant 0.000000e+00 : f32
    %7 = vector.broadcast %cst_6 : f32 to vector<128x32xf32>
    %8 = arith.maximumf %6, %7 : vector<128x32xf32>
    %9 = vector.shape_cast %8 : vector<128x32xf32> to vector<16x8x32xf32>
    %cst_7 = arith.constant dense<0xFF800000> : vector<16x32xf32>
    %10 = vector.multi_reduction <maximumf>, %9, %cst_7 [1] : vector<16x8x32xf32> to vector<16x32xf32>
    %c0_8 = arith.constant 0 : index
    %c0_9 = arith.constant 0 : index
    %11 = vector.load %arg4[%c0_8, %c0_9] : memref<32x64xf32, #tpu.memory_space<vmem>>, vector<32x64xf32>
    %cst_10 = arith.constant dense<0.000000e+00> : vector<128x64xf32>
    %12 = tpu.matmul %8, %11, %cst_10 {dimension_numbers = #tpu.dot_dimension_numbers<[1], [0], [0], [1], [0, 0, 1, 1], [], []>} : vector<128x32xf32>, vector<32x64xf32>, vector<128x64xf32> -> vector<128x64xf32>
    %13 = vector.shape_cast %12 : vector<128x64xf32> to vector<16x8x64xf32>
    %cst_11 = arith.constant dense<0xFF800000> : vector<16x64xf32>
    %14 = vector.multi_reduction <maximumf>, %13, %cst_11 [1] : vector<16x8x64xf32> to vector<16x64xf32>
    %c0_12 = arith.constant 0 : index
    %c0_13 = arith.constant 0 : index
    %15 = vector.load %arg5[%c0_12, %c0_13] : memref<32x64xf32, #tpu.memory_space<vmem>>, vector<32x64xf32>
    %cst_14 = arith.constant dense<0.000000e+00> : vector<16x64xf32>
    %16 = tpu.matmul %10, %15, %cst_14 {dimension_numbers = #tpu.dot_dimension_numbers<[1], [0], [0], [1], [0, 0, 1, 1], [], []>} : vector<16x32xf32>, vector<32x64xf32>, vector<16x64xf32> -> vector<16x64xf32>
    %c0_15 = arith.constant 0 : index
    %c0_16 = arith.constant 0 : index
    %17 = vector.load %arg6[%c0_15, %c0_16] : memref<1x64xf32, #tpu.memory_space<vmem>>, vector<1x64xf32>
    %18 = vector.broadcast %17 : vector<1x64xf32> to vector<16x64xf32>
    %19 = arith.addf %16, %18 : vector<16x64xf32>
    %20 = arith.addf %14, %19 : vector<16x64xf32>
    %cst_17 = arith.constant 0.000000e+00 : f32
    %21 = vector.broadcast %cst_17 : f32 to vector<16x64xf32>
    %22 = arith.maximumf %20, %21 : vector<16x64xf32>
    %c0_18 = arith.constant 0 : index
    %c0_19 = arith.constant 0 : index
    %23 = vector.load %arg7[%c0_18, %c0_19] : memref<16x64xf32, #tpu.memory_space<vmem>>, vector<16x64xf32>
    tpu.vector_store %arg7[%c0_18, %c0_19], %22 {strides = array<i32>} : memref<16x64xf32, #tpu.memory_space<vmem>>, vector<16x64xf32>,
    return
  }
  func.func @transform_0(%arg0: i32) -> (i32, i32, i32) {
    %c0_i32 = arith.constant 0 : i32
    %c0_i32_0 = arith.constant 0 : i32
    %c0_i32_1 = arith.constant 0 : i32
    return %arg0, %c0_i32, %c0_i32_0 : i32, i32, i32
  }
  func.func @transform_1(%arg0: i32) -> (i32, i32) {
    %c0_i32 = arith.constant 0 : i32
    %c0_i32_0 = arith.constant 0 : i32
    %c0_i32_1 = arith.constant 0 : i32
    return %c0_i32, %c0_i32_0 : i32, i32
  }
  func.func @transform_2(%arg0: i32) -> (i32, i32) {
    %c0_i32 = arith.constant 0 : i32
    %c0_i32_0 = arith.constant 0 : i32
    %c0_i32_1 = arith.constant 0 : i32
    return %c0_i32, %c0_i32_0 : i32, i32
  }
  func.func @transform_3(%arg0: i32) -> (i32, i32) {
    %c0_i32 = arith.constant 0 : i32
    %c0_i32_0 = arith.constant 0 : i32
    %c0_i32_1 = arith.constant 0 : i32
    return %c0_i32, %c0_i32_0 : i32, i32
  }
  func.func @transform_4(%arg0: i32) -> (i32, i32) {
    %c0_i32 = arith.constant 0 : i32
    %c0_i32_0 = arith.constant 0 : i32
    %c0_i32_1 = arith.constant 0 : i32
    return %c0_i32, %c0_i32_0 : i32, i32
  }
  func.func @transform_5(%arg0: i32) -> (i32, i32) {
    %c0_i32 = arith.constant 0 : i32
    %c0_i32_0 = arith.constant 0 : i32
    %c0_i32_1 = arith.constant 0 : i32
    return %c0_i32, %c0_i32_0 : i32, i32
  }
  func.func @transform_6(%arg0: i32) -> (i32, i32) {
    %c0_i32 = arith.constant 0 : i32
    %c0_i32_0 = arith.constant 0 : i32
    return %arg0, %c0_i32 : i32, i32
  }
}

</mosaic_0001>

<bundles_post_ra>
// kernel: tpu_custom_call.1
= control target key start
LH: loop header
LB: loop body
LE: loop exit
PB: predicated region body
PF: predicated region fallthrough
CT: control target
= control target key end

     0   :  { %11 = vsyncpa [#allocation3], 0  ;;  %s1864_s0 = inlined_call_operand.vmem [shape: f32[32,8,10], index: 0, kind: input, shape index: {}]   ;;  %s1865_s1 = inlined_call_operand.vmem [shape: f32[10,32], index: 1, kind: input, shape index: {}]   ;;  %s1866_s2 = inlined_call_operand.vmem [shape: f32[1,32], index: 2, kind: input, shape index: {}]   ;;  %s1867_s3 = inlined_call_operand.vmem [shape: f32[32,64], index: 3, kind: input, shape index: {}]   ;;  %s1868_s4 = inlined_call_operand.vmem [shape: f32[32,64], index: 4, kind: input, shape index: {}]   ;;  %s1869_s5 = inlined_call_operand.vmem [shape: f32[1,64], index: 5, kind: input, shape index: {}]   ;;  %s1870_s6 = inlined_call_operand.hbm [shape: f32[32,64], index: 6, kind: output, shape index: {}]  }
   0x1   :  { %13 = vsyncpa [#allocation3 + $0x1], 0  ;;  %s1562_s21 = smov 0   ;;  %s1564_s22 = smov 0  }
   0x2   :  { %s1566_s23 = smov 0   ;;  %s1568_s24 = smov 0  }
   0x3 LB: > { %s1583_s25 = sadd.s32 4294967295, %s1521_s24   ;;  %s1230_s26 = sadd.s32 4294967294, %s1521_s24   ;;  %s1521_s24 = sphi %s1568_s24, %s1876_s24   ;;  %s1517_s23 = sphi %s1566_s23, %s1875_s23   ;;  %s1513_s22 = sphi %s1564_s22, %s1874_s22   ;;  %s1509_s21 = sphi %s1562_s21, %s1873_s21  }
   0x4   : > { %s1587_s27 = sadd.s32 1, %s1521_s24   ;;  %s157_s28 = sadd.s32 1, %s1517_s23 }
   0x5   : > { %s154_s29 = ssub.s32 %s1521_s24, %s1587_s27  ;;  %p167_p0 = scmp.ne.s32.totalorder %s1517_s23, %s1513_s22 }
   0x6   : > { %p155_p1 = scmp.eq.s32.totalorder %s154_s29, 0  ;;  %p168_p2 = scmp.eq.s32.totalorder %s1583_s25, 1 }
   0x7   : > { %p173_p3 = scmp.ne.s32.totalorder %s1513_s22, %s1509_s21  ;;  %p174_p4 = scmp.eq.s32.totalorder %s1230_s26, 1 }
   0x8   : > { %s1598_s30 = scalar_select %p155_p1, %s1517_s23, %s157_s28  }
   0x9   : > { %p1600_p5 = por %p168_p2, %p167_p0  ;;  %p1604_p6 = por %p174_p4, %p173_p3 }
   0xa   : > { %p1233_p7 = scmp.ge.s32.totalorder %s1521_s24, 1  ;;  %p216_p8 = scmp.lt.s32.totalorder %s1521_s24, 3 }
   0xc   : > { %p217_p9 = pnand %p1233_p7, %p216_p8 }
   0xd   : > { %v269_v0 = vld [vmem:[%s1865_s1] sm:$0xff] (!%p217_p9)  ;;  %v270_v1 = vld [vmem:[%s1865_s1 + $0x8] sm:$0x3] (!%p217_p9)  ;;  %vm327_vm0 = vcmask (!%p217_p9), 1041408   ;;  %s1235_s13 = sshll.u32 (!%p217_p9), %s1583_s25, 4  ;;  %vm1523_vm1 = vmmov (!%p217_p9), 1  }
   0xe   : > { %220 = sbr.rel (%p217_p9) target bundleno = 540 (0x21c), region = 44  ;;  %v1395_v2 = vpack.c.bf16 (!%p217_p9), %v270_v1, %v269_v0  ;;  %vm1396_vm2 = vmpackc.low (!%p217_p9), %vm327_vm0, %vm1523_vm1  ;;  %p247_p10 = scmp.lt.s32.totalorder (!%p217_p9), %s1235_s13, 31  ;;  %v605_v3 = vld [vmem:[%s1867_s3] sm:$0xff] (!%p217_p9)  ;;  %v606_v4 = vld [vmem:[%s1867_s3 + $0x8] sm:$0xff] (!%p217_p9)  ;;  %vm278_vm3 = vcmask (!%p217_p9), 80896   ;;  %vm492_vm4 = vcmask (!%p217_p9), 261120  }
   0xf   : > { %v1401_v5 = vpack.c.bf16 (!%p217_p9), %v606_v4, %v605_v3  ;;  %v607_v22 = vld [vmem:[%s1867_s3 + $0x10] sm:$0xff] (!%p217_p9)  ;;  %v608_v23 = vld [vmem:[%s1867_s3 + $0x18] sm:$0xff] (!%p217_p9)  ;;  %v915_v25 = vld [vmem:[%s1868_s4] sm:$0xff] (!%p217_p9)  ;;  %vm942_vm5 = vcmask (!%p217_p9), 1041409   ;;  %vm944_vm6 = vcmask (!%p217_p9), 1042434   ;;  %vm946_vm7 = vcmask (!%p217_p9), 1043459  }
  0x10   : > { %1397 = vmatprep.subr.msk.bf16.mxu0 (!%p217_p9), %vm1396_vm2, %v1395_v2  ;;  %v1405_v24 = vpack.c.bf16 (!%p217_p9), %v608_v23, %v607_v22  ;;  %v916_v26 = vld [vmem:[%s1868_s4 + $0x8] sm:$0xff] (!%p217_p9)  ;;  %v917_v28 = vld [vmem:[%s1868_s4 + $0x10] sm:$0xff] (!%p217_p9)  ;;  %v918_v29 = vld [vmem:[%s1868_s4 + $0x18] sm:$0xff] (!%p217_p9)  ;;  %vm948_vm8 = vcmask (!%p217_p9), 1044484   ;;  %vm950_vm9 = vcmask (!%p217_p9), 1045509   ;;  %vm952_vm10 = vcmask (!%p217_p9), 1046534  }
  0x11   : > { %1400 = vmatpush3.bf16.msk.msra.mxu0 (!%p217_p9), %vm1396_vm2, %v1395_v2  ;;  %1402 = vmatprep.subr.bf16.mxu1 (!%p217_p9), %v1401_v5  ;;  %v1409_v27 = vpack.c.bf16 (!%p217_p9), %v916_v26, %v915_v25  ;;  %v1413_v30 = vpack.c.bf16 (!%p217_p9), %v918_v29, %v917_v28  ;;  %v1681_v31 = vld [vmem:[%s1866_s2] ss:$0 sm:$0xff] (!%p217_p9)  ;;  %vm954_vm11 = vcmask (!%p217_p9), 1047559   ;;  %vm802_vm12 = vcmask (!%p217_p9), 523264   ;;  %s243_s29 = sand.u32 (!%p217_p9), 1, %s1513_s22   ;;  %s1279_s10 = sshll.u32 (!%p217_p9), %s1583_s25, 8 }
  0x12   : > { %1404 = vmatpush3.bf16.msra.mxu1 (!%p217_p9), %v1401_v5  ;;  %s1794_s9 = sshll.u32 (!%p217_p9), %s243_s29, 4  ;;  %s1813_s14 = scalar_lea.hbm (!%p217_p9), %s1870_s6, %s1279_s10 }
  0x13   : > { %1406 = vmatprep.subr.bf16.mxu1 (!%p217_p9), %v1405_v24  ;;  %1410 = vmatprep.subr.bf16.mxu0 (!%p217_p9), %v1409_v27  ;;  %s245_s11 = scalar_lea.vmem (!%p217_p9), [#allocation2], %s1794_s9  ;;  %s1823_s15 = scalar_lea.sflag (!%p217_p9), [#allocation3], %s243_s29 }
  0x14   : > { %s1168_s12 = sshll.u32 (!%p217_p9), %s245_s11, 4  ;;  %s1524_s17 = smov (!%p217_p9), [#allocation2]   ;;  %s1815_s12 = int_to_ptr.vmem [resolvable:$true] %s1168_s12 }
  0x15   : > { %s1878_s13 = smov (!%p247_p10, %s1235_s13), 31  ;;  %s1459_s16 = scalar_lea.vmem %s1815_s12, 256 }
  0x16   : > { %s1236_s18 = sshll.u32 %s1878_s13, 3  ;;  %1408 = vmatpush3.bf16.msra.mxu1 %v1405_v24  ;;  %p1460_p11 = scmp.ne.s32.totalorder %s1815_s12, %s1459_s16 }
  0x17   : > { %s1626_s26 = scalar_lea.vmem %s1864_s0, %s1236_s18  ;;  %s1463_s18 = sshll.u32 %s1524_s17, 4  ;;  %s1464_s18 = int_to_ptr.vmem [resolvable:$false] %s1463_s18 }
  0x18   : > { %v253_v6 = vld [vmem:[%s1626_s26] sm:$0xff]  ;;  %v254_v7 = vld [vmem:[%s1626_s26 + $0x8] sm:$0xff]  ;;  %v255_v8 = vld [vmem:[%s1626_s26 + $0x10] sm:$0xff]  ;;  %p1461_p12 = pnand %p1460_p11, %p1600_p5  ;;  %s1465_s19 = scalar_lea.vmem %s1464_s18, 512 }
  0x19   : > { %1328 = vmatprep.mubr.msk.f32.mxu0 %vm278_vm3, %v253_v6  ;;  %v256_v9 = vld [vmem:[%s1626_s26 + $0x18] sm:$0xff]  ;;  %v257_v10 = vld [vmem:[%s1626_s26 + $0x20] sm:$0xff]  ;;  %v258_v11 = vld [vmem:[%s1626_s26 + $0x28] sm:$0xff]  ;;  %p1466_p0 = scmp.lt.s32.totalorder %s1815_s12, %s1464_s18  ;;  %p1467_p1 = scmp.lt.s32.totalorder %s1465_s19, %s1459_s16 }
  0x1a   : > { %1329 = vmatmul.mubr.msk.f32.vlgmr.msra.gmra.mrb[0].mxu0 %vm278_vm3, %v254_v7  ;;  %v259_v12 = vld [vmem:[%s1626_s26 + $0x30] sm:$0xff]  ;;  %v260_v13 = vld [vmem:[%s1626_s26 + $0x38] sm:$0xff]  ;;  %v261_v14 = vld [vmem:[%s1626_s26 + $0x40] sm:$0xff]  ;;  %p1462_p13 = pneg %p1461_p12 }
  0x1b   : > { %1331 = vmatprep.mubr.msk.f32.mxu0 %vm278_vm3, %v255_v8  ;;  %v262_v15 = vld [vmem:[%s1626_s26 + $0x48] sm:$0xff]  ;;  %v263_v16 = vld [vmem:[%s1626_s26 + $0x50] sm:$0xff]  ;;  %v264_v17 = vld [vmem:[%s1626_s26 + $0x58] sm:$0xff]  ;;  %1412 = vmatpush3.bf16.msra.mxu0 %v1409_v27  ;;  %p1468_p2 = por %p1467_p1, %p1466_p0 }
  0x1c   : > { %v265_v18 = vld [vmem:[%s1626_s26 + $0x60] sm:$0xff]  ;;  %v266_v19 = vld [vmem:[%s1626_s26 + $0x68] sm:$0xff]  ;;  %v267_v20 = vld [vmem:[%s1626_s26 + $0x70] sm:$0xff]  ;;  %1414 = vmatprep.subr.bf16.mxu0 %v1413_v30 }
  0x1d   : > { %v268_v21 = vld [vmem:[%s1626_s26 + $0x78] sm:$0xff]  ;;  %p1469_p3 = pnand %p1468_p2, %p1462_p13 }
  0x1e   : > { %1332 = vmatmul.mubr.msk.f32.gmra.mrb[2].mxu0 %vm278_vm3, %v256_v9 }
  0x1f   : > { %1334 = vmatprep.mubr.msk.f32.mxu0 %vm278_vm3, %v257_v10  ;;  %1416 = vmatpush3.bf16.msra.mxu0 %v1413_v30 }
  0x22   : > { %1335 = vmatmul.mubr.msk.f32.gmra.mrb[4].mxu0 %vm278_vm3, %v258_v11 }
  0x23   : > { %1337 = vmatprep.mubr.msk.f32.mxu0 %vm278_vm3, %v259_v12 }
  0x26   : > { %1338 = vmatmul.mubr.msk.f32.gmra.mrb[6].mxu0 %vm278_vm3, %v260_v13 }
  0x27   : > { %1340 = vmatprep.mubr.msk.f32.mxu0 %vm278_vm3, %v261_v14 }
  0x2a   : > { %1341 = vmatmul.mubr.msk.f32.gmra.mrb[8].mxu0 %vm278_vm3, %v262_v15 }
  0x2b   : > { %1343 = vmatprep.mubr.msk.f32.mxu0 %vm278_vm3, %v263_v16 }
  0x2e   : > { %1344 = vmatmul.mubr.msk.f32.gmra.mrb[10].mxu0 %vm278_vm3, %v264_v17 }
  0x2f   : > { %1346 = vmatprep.mubr.msk.f32.mxu0 %vm278_vm3, %v265_v18 }
  0x32   : > { %1347 = vmatmul.mubr.msk.f32.gmra.mrb[12].mxu0 %vm278_vm3, %v266_v19 }
  0x33   : > { %1349 = vmatprep.mubr.msk.f32.mxu0 %vm278_vm3, %v267_v20 }
  0x36   : > { %1350 = vmatmul.mubr.msk.f32.gmra.mrb[14].mxu0 %vm278_vm3, %v268_v21 }
  0xed   : > { %v1330_v32 = vpop.f32.mrb[0].mxu0 }
  0xee   : > { %v403_v33 = vadd.f32 %v1330_v32, %v1681_v31  ;;  %v397_v34 = vpop.f32.mrb[1].mxu0 }
  0xef   : > { %v398_v35 = vadd.f32 %v1681_v31, %v397_v34 }
  0xf0   : > { %v477_v36 = vmax.f32 %v403_v33, 0.0 }
  0xf1   : > { %v476_v37 = vmax.f32 %v398_v35, 0.0  ;;  %v1333_v38 = vpop.f32.mrb[2].mxu0 }
  0xf2   : > { %v500_v39 = vsel %vm492_vm4, %v477_v36, -inf  ;;  %v413_v40 = vadd.f32 %v1333_v38, %v1681_v31  ;;  %v407_v41 = vpop.f32.mrb[3].mxu0 }
  0xf3   : > { %v501_v42 = vrot.slane %v500_v39, 4  ;;  %v493_v43 = vsel %vm492_vm4, %v476_v37, -inf  ;;  %v408_v44 = vadd.f32 %v1681_v31, %v407_v41  ;;  %1360 = vmatprep.mubr.msk.f32.mxu1 %vm492_vm4, %v476_v37 }
  0xf4   : > { %v494_v45 = vrot.slane %v493_v43, 4  ;;  %v479_v46 = vmax.f32 %v413_v40, 0.0  ;;  %1361 = vmatmul.mubr.msk.f32.vlgmr.msra.gmra.mrb[0].mxu1 %vm492_vm4, %v477_v36 }
  0xf5   : > { %v502_v47 = vmax.f32 %v500_v39, %v501_v42  ;;  %v478_v48 = vmax.f32 %v408_v44, 0.0  ;;  %v1336_v49 = vpop.f32.mrb[4].mxu0 }
  0xf6   : > { %v495_v50 = vmax.f32 %v493_v43, %v494_v45  ;;  %v514_v51 = vsel %vm492_vm4, %v479_v46, -inf  ;;  %v423_v52 = vadd.f32 %v1336_v49, %v1681_v31  ;;  %v417_v53 = vpop.f32.mrb[5].mxu0 }
  0xf7   : > { %v503_v54 = vrot.slane %v502_v47, 2  ;;  %v515_v55 = vrot.slane %v514_v51, 4  ;;  %v507_v56 = vsel %vm492_vm4, %v478_v48, -inf  ;;  %v418_v57 = vadd.f32 %v1681_v31, %v417_v53  ;;  %1363 = vmatprep.mubr.msk.f32.mxu1 %vm492_vm4, %v478_v48 }
  0xf8   : > { %v496_v58 = vrot.slane %v495_v50, 2  ;;  %v508_v59 = vrot.slane %v507_v56, 4  ;;  %v481_v60 = vmax.f32 %v423_v52, 0.0  ;;  %1364 = vmatmul.mubr.msk.f32.gmra.mrb[2].mxu1 %vm492_vm4, %v479_v46 }
  0xf9   : > { %v504_v61 = vmax.f32 %v502_v47, %v503_v54  ;;  %v516_v62 = vmax.f32 %v514_v51, %v515_v55  ;;  %v480_v63 = vmax.f32 %v418_v57, 0.0  ;;  %v1339_v0 = vpop.f32.mrb[6].mxu0 }
  0xfa   : > { %v497_v1 = vmax.f32 %v495_v50, %v496_v58  ;;  %v509_v2 = vmax.f32 %v507_v56, %v508_v59  ;;  %v528_v3 = vsel %vm492_vm4, %v481_v60, -inf  ;;  %v433_v4 = vadd.f32 %v1339_v0, %v1681_v31  ;;  %v427_v5 = vpop.f32.mrb[7].mxu0 }
  0xfb   : > { %v505_v6 = vrot.slane %v504_v61, 1  ;;  %v517_v7 = vrot.slane %v516_v62, 2  ;;  %v529_v8 = vrot.slane %v528_v3, 4  ;;  %v521_v9 = vsel %vm492_vm4, %v480_v63, -inf  ;;  %1366 = vmatprep.mubr.msk.f32.mxu1 %vm492_vm4, %v480_v63 }
  0xfc   : > { %v498_v10 = vrot.slane %v497_v1, 1  ;;  %v510_v11 = vrot.slane %v509_v2, 2  ;;  %v522_v12 = vrot.slane %v521_v9, 4  ;;  %v483_v13 = vmax.f32 %v433_v4, 0.0  ;;  %1367 = vmatmul.mubr.msk.f32.gmra.mrb[4].mxu1 %vm492_vm4, %v481_v60 }
  0xfd   : > { %v506_v14 = vmax.f32 %v504_v61, %v505_v6  ;;  %v518_v15 = vmax.f32 %v516_v62, %v517_v7  ;;  %v530_v16 = vmax.f32 %v528_v3, %v529_v8  ;;  %v428_v17 = vadd.f32 %v1681_v31, %v427_v5  ;;  %v1342_v18 = vpop.f32.mrb[8].mxu0 }
  0xfe   : > { %v499_v19 = vmax.f32 %v497_v1, %v498_v10  ;;  %v511_v20 = vmax.f32 %v509_v2, %v510_v11  ;;  %v523_v21 = vmax.f32 %v521_v9, %v522_v12  ;;  %v542_v22 = vsel %vm492_vm4, %v483_v13, -inf  ;;  %v437_v23 = vpop.f32.mrb[9].mxu0 }
  0xff   : > { %v531_v24 = vrot.slane %v530_v16, 2  ;;  %v543_v25 = vrot.slane %v542_v22, 4  ;;  %v482_v26 = vmax.f32 %v428_v17, 0.0  ;;  %v443_v30 = vadd.f32 %v1342_v18, %v1681_v31 }
 0x100   : > { %v943_v27 = vsel %vm942_vm5, %v506_v14, %v499_v19  ;;  %v512_v28 = vrot.slane %v511_v20, 1  ;;  %v524_v29 = vrot.slane %v523_v21, 2  ;;  %v519_v32 = vrot.slane %v518_v15, 1 }
 0x101   : > { %v532_v33 = vmax.f32 %v530_v16, %v531_v24  ;;  %v544_v34 = vmax.f32 %v542_v22, %v543_v25  ;;  %v535_v35 = vsel %vm492_vm4, %v482_v26, -inf  ;;  %1369 = vmatprep.mubr.msk.f32.mxu1 %vm492_vm4, %v482_v26  ;;  %v1345_v36 = vpop.f32.mrb[10].mxu0  ;;  %v485_v40 = vmax.f32 %v443_v30, 0.0 }
 0x102   : > { %v513_v37 = vmax.f32 %v511_v20, %v512_v28  ;;  %v1708_v38 = vmax.f32 %v523_v21, %v524_v29  ;;  %v536_v39 = vrot.slane %v535_v35, 4  ;;  %1370 = vmatmul.mubr.msk.f32.gmra.mrb[6].mxu1 %vm492_vm4, %v483_v13  ;;  %v447_v41 = vpop.f32.mrb[11].mxu0  ;;  %v438_v44 = vadd.f32 %v1681_v31, %v437_v23 }
 0x103   : > { %v533_v42 = vrot.slane %v532_v33, 1  ;;  %v545_v43 = vrot.slane %v544_v34, 2  ;;  %v453_v45 = vadd.f32 %v1345_v36, %v1681_v31  ;;  %v556_v48 = vsel %vm492_vm4, %v485_v40, -inf }
 0x104   : > { %v1714_v46 = vsel %vm944_vm6, %v513_v37, %v943_v27  ;;  %v537_v47 = vmax.f32 %v535_v35, %v536_v39  ;;  %v1717_v49 = vmax.f32 %v518_v15, %v519_v32  ;;  %v526_v50 = vrot.slane %v1708_v38, 1 }
 0x105   : > { %v557_v51 = vrot.slane %v556_v48, 4  ;;  %v484_v52 = vmax.f32 %v438_v44, 0.0  ;;  %v1348_v53 = vpop.f32.mrb[12].mxu0  ;;  %v1720_v54 = vmax.f32 %v544_v34, %v545_v43  ;;  %v487_v56 = vmax.f32 %v453_v45, 0.0 }
 0x106   : > { %v538_v55 = vrot.slane %v537_v47, 2  ;;  %v448_v57 = vadd.f32 %v1681_v31, %v447_v41  ;;  %v457_v58 = vpop.f32.mrb[13].mxu0  ;;  %v1723_v59 = vmax.f32 %v532_v33, %v533_v42  ;;  %v463_v62 = vadd.f32 %v1348_v53, %v1681_v31 }
 0x107   : > { %v558_v60 = vmax.f32 %v556_v48, %v557_v51  ;;  %v549_v61 = vsel %vm492_vm4, %v484_v52, -inf  ;;  %1372 = vmatprep.mubr.msk.f32.mxu1 %vm492_vm4, %v484_v52  ;;  %v570_v1 = vsel %vm492_vm4, %v487_v56, -inf  ;;  %v458_v6 = vadd.f32 %v1681_v31, %v457_v58 }
 0x108   : > { %v539_v63 = vmax.f32 %v537_v47, %v538_v55  ;;  %v550_v0 = vrot.slane %v549_v61, 4  ;;  %v486_v2 = vmax.f32 %v448_v57, 0.0  ;;  %1373 = vmatmul.mubr.msk.f32.gmra.mrb[8].mxu1 %vm492_vm4, %v485_v40  ;;  %v571_v4 = vrot.slane %v570_v1, 4 }
 0x109   : > { %v559_v3 = vrot.slane %v558_v60, 2  ;;  %v489_v5 = vmax.f32 %v463_v62, 0.0  ;;  %v1351_v7 = vpop.f32.mrb[14].mxu0  ;;  %v547_v8 = vrot.slane %v1720_v54, 1  ;;  %v488_v20 = vmax.f32 %v458_v6, 0.0 }
 0x10a   : > { %v551_v9 = vmax.f32 %v549_v61, %v550_v0  ;;  %v563_v10 = vsel %vm492_vm4, %v486_v2, -inf  ;;  %1375 = vmatprep.mubr.msk.f32.mxu1 %vm492_vm4, %v486_v2  ;;  %v473_v11 = vadd.f32 %v1351_v7, %v1681_v31  ;;  %v467_v12 = vpop.f32.mrb[15].mxu0  ;;  %v572_v14 = vmax.f32 %v570_v1, %v571_v4 }
 0x10b   : > { %v560_v13 = vmax.f32 %v558_v60, %v559_v3  ;;  %v564_v15 = vrot.slane %v563_v10, 4  ;;  %v584_v16 = vsel %vm492_vm4, %v489_v5, -inf  ;;  %v540_v17 = vrot.slane %v539_v63, 1 }
 0x10c   : > { %v552_v18 = vrot.slane %v551_v9, 2  ;;  %v585_v19 = vrot.slane %v584_v16, 4  ;;  %1376 = vmatmul.mubr.msk.f32.gmra.mrb[10].mxu1 %vm492_vm4, %v487_v56  ;;  %v573_v22 = vrot.slane %v572_v14, 2  ;;  %v491_v24 = vmax.f32 %v473_v11, 0.0 }
 0x10d   : > { %v561_v21 = vrot.slane %v560_v13, 1  ;;  %v565_v23 = vmax.f32 %v563_v10, %v564_v15  ;;  %v577_v27 = vsel %vm492_vm4, %v488_v20, -inf  ;;  %v468_v28 = vadd.f32 %v1681_v31, %v467_v12  ;;  %1378 = vmatprep.mubr.msk.f32.mxu1 %vm492_vm4, %v488_v20 }
 0x10e   : > { %v553_v25 = vmax.f32 %v551_v9, %v552_v18  ;;  %v586_v26 = vmax.f32 %v584_v16, %v585_v19  ;;  %v574_v30 = vmax.f32 %v572_v14, %v573_v22  ;;  %v578_v33 = vrot.slane %v577_v27, 4 }
 0x10f   : > { %v562_v29 = vmax.f32 %v560_v13, %v561_v21  ;;  %v566_v32 = vrot.slane %v565_v23, 2  ;;  %v598_v36 = vsel %vm492_vm4, %v491_v24, -inf  ;;  %v490_v37 = vmax.f32 %v468_v28, 0.0 }
 0x110   : > { %v554_v34 = vrot.slane %v553_v25, 1  ;;  %v587_v35 = vrot.slane %v586_v26, 2  ;;  %1379 = vmatmul.mubr.msk.f32.gmra.mrb[12].mxu1 %vm492_vm4, %v489_v5  ;;  %v527_v39 = vmax.f32 %v1708_v38, %v526_v50  ;;  %v579_v41 = vmax.f32 %v577_v27, %v578_v33 }
 0x111   : > { %v567_v40 = vmax.f32 %v565_v23, %v566_v32  ;;  %v599_v42 = vrot.slane %v598_v36, 4  ;;  %v575_v31 = vrot.slane %v574_v30, 1  ;;  %v591_v45 = vsel %vm492_vm4, %v490_v37, -inf  ;;  %1381 = vmatprep.mubr.msk.f32.mxu1 %vm492_vm4, %v490_v37 }
 0x112   : > { %v555_v43 = vmax.f32 %v553_v25, %v554_v34  ;;  %v588_v44 = vmax.f32 %v586_v26, %v587_v35  ;;  %v541_v47 = vmax.f32 %v539_v63, %v540_v17  ;;  %v580_v51 = vrot.slane %v579_v41, 2 }
 0x113   : > { %v568_v48 = vrot.slane %v567_v40, 1  ;;  %v600_v52 = vmax.f32 %v598_v36, %v599_v42  ;;  %v592_v55 = vrot.slane %v591_v45, 4  ;;  %v548_v56 = vmax.f32 %v1720_v54, %v547_v8 }
 0x114   : > { %v956_v53 = vsel %vm942_vm5, %v562_v29, %v555_v43  ;;  %v947_v38 = vsel %vm946_vm7, %v1717_v49, %v1714_v46  ;;  %1382 = vmatmul.mubr.msk.f32.gmra.mrb[14].mxu1 %vm492_vm4, %v491_v24  ;;  %v581_v57 = vmax.f32 %v579_v41, %v580_v51  ;;  %v576_v61 = vmax.f32 %v574_v30, %v575_v31 }
 0x115   : > { %v569_v50 = vmax.f32 %v567_v40, %v568_v48  ;;  %v601_v58 = vrot.slane %v600_v52, 2  ;;  %v949_v60 = vsel %vm948_vm8, %v527_v39, %v947_v38  ;;  %v589_v62 = vrot.slane %v588_v44, 1 }
 0x116   : > { %v593_v63 = vmax.f32 %v591_v45, %v592_v55  ;;  %v951_v0 = vsel %vm950_vm9, %v1723_v59, %v949_v60  ;;  %v582_v54 = vrot.slane %v581_v57, 1 }
 0x117   : > { %v957_v1 = vsel %vm944_vm6, %v569_v50, %v956_v53  ;;  %v602_v2 = vmax.f32 %v600_v52, %v601_v58  ;;  %v953_v3 = vsel %vm952_vm10, %v541_v47, %v951_v0  ;;  %v590_v6 = vmax.f32 %v588_v44, %v589_v62 }
 0x118   : > { %v958_v46 = vsel %vm946_vm7, %v576_v61, %v957_v1  ;;  %v594_v49 = vrot.slane %v593_v63, 2  ;;  %v955_v4 = vsel %vm954_vm11, %v548_v56, %v953_v3  ;;  %v583_v5 = vmax.f32 %v581_v57, %v582_v54 }
 0x119   : > { %1392 = vmatprep.mubr.msk.f32.mxu0 %vm492_vm4, %v955_v4  ;;  %v603_v9 = vrot.slane %v602_v2, 1 }
 0x11a   : > { %v595_v7 = vmax.f32 %v593_v63, %v594_v49  ;;  %v959_v8 = vsel %vm948_vm8, %v583_v5, %v958_v46 }
 0x11b   : > { %v960_v10 = vsel %vm950_vm9, %v590_v6, %v959_v8  ;;  %v604_v12 = vmax.f32 %v602_v2, %v603_v9 }
 0x11c   : > { %v596_v59 = vrot.slane %v595_v7, 1 }
 0x11e   : > { %v597_v11 = vmax.f32 %v595_v7, %v596_v59 }
 0x120   : > { %v961_v13 = vsel %vm952_vm10, %v597_v11, %v960_v10 }
 0x121   : > { %v962_v14 = vsel %vm954_vm11, %v604_v12, %v961_v13 }
 0x122   : > { %1393 = vmatmul.mubr.msk.f32.vlgmr.msra.gmra.mrb[16].mxu0 %vm492_vm4, %v962_v14 }
 0x1c7   : > { %v1362_v15 = vpop.f32.mrb[0].mxu1 }
 0x1c8   : > { %v723_v16 = vpop.f32.mrb[1].mxu1  ;;  %v810_v21 = vsel %vm802_vm12, %v1362_v15, -inf }
 0x1c9   : > { %v811_v22 = vrot.slane %v810_v21, 4  ;;  %v803_v23 = vsel %vm802_vm12, %v723_v16, -inf }
 0x1ca   : > { %v804_v26 = vrot.slane %v803_v23, 4 }
 0x1cb   : > { %v1365_v17 = vpop.f32.mrb[2].mxu1  ;;  %v812_v27 = vmax.f32 %v810_v21, %v811_v22 }
 0x1cc   : > { %v733_v18 = vpop.f32.mrb[3].mxu1  ;;  %v805_v28 = vmax.f32 %v803_v23, %v804_v26  ;;  %v824_v29 = vsel %vm802_vm12, %v1365_v17, -inf }
 0x1cd   : > { %v813_v32 = vrot.slane %v812_v27, 2  ;;  %v817_v33 = vsel %vm802_vm12, %v733_v18, -inf  ;;  %v825_v40 = vrot.slane %v824_v29, 4 }
 0x1ce   : > { %v806_v43 = vrot.slane %v805_v28, 2  ;;  %v818_v31 = vrot.slane %v817_v33, 4 }
 0x1cf   : > { %v1368_v19 = vpop.f32.mrb[4].mxu1  ;;  %v1774_v48 = vmax.f32 %v812_v27, %v813_v32  ;;  %v826_v57 = vmax.f32 %v824_v29, %v825_v40 }
 0x1d0   : > { %v743_v20 = vpop.f32.mrb[5].mxu1  ;;  %v838_v34 = vsel %vm802_vm12, %v1368_v19, -inf  ;;  %v1778_v61 = vmax.f32 %v805_v28, %v806_v43  ;;  %v819_v62 = vmax.f32 %v817_v33, %v818_v31 }
 0x1d1   : > { %v831_v35 = vsel %vm802_vm12, %v743_v20, -inf  ;;  %v839_v44 = vrot.slane %v838_v34, 4  ;;  %v815_v54 = vrot.slane %v1774_v48, 1  ;;  %v827_v8 = vrot.slane %v826_v57, 2 }
 0x1d2   : > { %v832_v45 = vrot.slane %v831_v35, 4  ;;  %v820_v11 = vrot.slane %v819_v62, 2 }
 0x1d3   : > { %v840_v63 = vmax.f32 %v838_v34, %v839_v44  ;;  %v828_v29 = vmax.f32 %v826_v57, %v827_v8 }
 0x1d4   : > { %v833_v0 = vmax.f32 %v831_v35, %v832_v45 }
 0x1d5   : > { %v1371_v24 = vpop.f32.mrb[6].mxu1  ;;  %v841_v12 = vrot.slane %v840_v63, 2 }
 0x1d6   : > { %v753_v25 = vpop.f32.mrb[7].mxu1  ;;  %v852_v37 = vsel %vm802_vm12, %v1371_v24, -inf  ;;  %v834_v13 = vrot.slane %v833_v0, 2 }
 0x1d7   : > { %v845_v39 = vsel %vm802_vm12, %v753_v25, -inf  ;;  %v853_v51 = vrot.slane %v852_v37, 4  ;;  %v842_v34 = vmax.f32 %v840_v63, %v841_v12  ;;  %v816_v63 = vmax.f32 %v1774_v48, %v815_v54 }
 0x1d8   : > { %v846_v52 = vrot.slane %v845_v39, 4  ;;  %v835_v35 = vmax.f32 %v833_v0, %v834_v13 }
 0x1d9   : > { %v854_v2 = vmax.f32 %v852_v37, %v853_v51  ;;  %v829_v51 = vrot.slane %v828_v29, 1 }
 0x1da   : > { %v847_v3 = vmax.f32 %v845_v39, %v846_v52 }
 0x1db   : > { %v1374_v30 = vpop.f32.mrb[8].mxu1  ;;  %v855_v16 = vrot.slane %v854_v2, 2 }
 0x1dc   : > { %v763_v36 = vpop.f32.mrb[9].mxu1  ;;  %v866_v41 = vsel %vm802_vm12, %v1374_v30, -inf  ;;  %v848_v17 = vrot.slane %v847_v3, 2  ;;  %v821_v30 = vmax.f32 %v819_v62, %v820_v11 }
 0x1dd   : > { %v859_v42 = vsel %vm802_vm12, %v763_v36, -inf  ;;  %v867_v56 = vrot.slane %v866_v41, 4  ;;  %v856_v36 = vmax.f32 %v854_v2, %v855_v16 }
 0x1de   : > { %v860_v38 = vrot.slane %v859_v42, 4  ;;  %v849_v39 = vmax.f32 %v847_v3, %v848_v17 }
 0x1df   : > { %v1377_v47 = vpop.f32.mrb[10].mxu1  ;;  %v868_v4 = vmax.f32 %v866_v41, %v867_v56  ;;  %v843_v56 = vrot.slane %v842_v34, 1  ;;  %v857_v57 = vrot.slane %v856_v36, 1 }
 0x1e0   : > { %v880_v53 = vsel %vm802_vm12, %v1377_v47, -inf  ;;  %v773_v55 = vpop.f32.mrb[11].mxu1  ;;  %v861_v5 = vmax.f32 %v859_v42, %v860_v38  ;;  %v808_v47 = vrot.slane %v1778_v61, 1  ;;  %v836_v38 = vrot.slane %v835_v35, 1 }
 0x1e1   : > { %v873_v50 = vsel %vm802_vm12, %v773_v55, -inf  ;;  %v881_v58 = vrot.slane %v880_v53, 4  ;;  %v869_v21 = vrot.slane %v868_v4, 2  ;;  %v822_v55 = vrot.slane %v821_v30, 1 }
 0x1e2   : > { %v874_v60 = vrot.slane %v873_v50, 4  ;;  %v862_v22 = vrot.slane %v861_v5, 2  ;;  %v809_v3 = vmax.f32 %v1778_v61, %v808_v47  ;;  %v844_v8 = vmax.f32 %v842_v34, %v843_v56 }
 0x1e3   : > { %v1380_v1 = vpop.f32.mrb[12].mxu1  ;;  %v882_v9 = vmax.f32 %v880_v53, %v881_v58  ;;  %v870_v40 = vmax.f32 %v868_v4, %v869_v21  ;;  %v850_v58 = vrot.slane %v849_v39, 1 }
 0x1e4   : > { %v894_v46 = vsel %vm802_vm12, %v1380_v1, -inf  ;;  %v783_v49 = vpop.f32.mrb[13].mxu1  ;;  %v875_v59 = vmax.f32 %v873_v50, %v874_v60  ;;  %v863_v41 = vmax.f32 %v861_v5, %v862_v22  ;;  %v1271_v5 = vld [vmem:[%s1869_s5] ss:$0 sm:$0xff] }
 0x1e5   : > { %v895_v6 = vrot.slane %v894_v46, 4  ;;  %v887_v7 = vsel %vm802_vm12, %v783_v49, -inf  ;;  %v883_v25 = vrot.slane %v882_v9, 2  ;;  %v871_v60 = vrot.slane %v870_v40, 1 }
 0x1e6   : > { %v888_v10 = vrot.slane %v887_v7, 4  ;;  %v876_v26 = vrot.slane %v875_v59, 2  ;;  %v864_v62 = vrot.slane %v863_v41, 1 }
 0x1e7   : > { %v896_v14 = vmax.f32 %v894_v46, %v895_v6  ;;  %v1383_v15 = vpop.f32.mrb[14].mxu1  ;;  %v884_v43 = vmax.f32 %v882_v9, %v883_v25  ;;  %v830_v6 = vmax.f32 %v828_v29, %v829_v51  ;;  %v837_v9 = vmax.f32 %v835_v35, %v836_v38 }
 0x1e8   : > { %v889_v18 = vmax.f32 %v887_v7, %v888_v10  ;;  %v908_v19 = vsel %vm802_vm12, %v1383_v15, -inf  ;;  %v793_v20 = vpop.f32.mrb[15].mxu1  ;;  %v877_v31 = vmax.f32 %v875_v59, %v876_v26  ;;  %v823_v7 = vmax.f32 %v821_v30, %v822_v55 }
 0x1e9   : > { %v909_v23 = vrot.slane %v908_v19, 4  ;;  %v901_v24 = vsel %vm802_vm12, %v793_v20, -inf  ;;  %v897_v27 = vrot.slane %v896_v14, 2  ;;  %v885_v0 = vrot.slane %v884_v43, 1 }
 0x1ea   : > { %v902_v28 = vrot.slane %v901_v24, 4  ;;  %v890_v32 = vrot.slane %v889_v18, 2  ;;  %v878_v1 = vrot.slane %v877_v31, 1  ;;  %v858_v59 = vmax.f32 %v856_v36, %v857_v57 }
 0x1eb   : > { %v910_v33 = vmax.f32 %v908_v19, %v909_v23  ;;  %v898_v44 = vmax.f32 %v896_v14, %v897_v27  ;;  %v851_v10 = vmax.f32 %v849_v39, %v850_v58  ;;  %v872_v11 = vmax.f32 %v870_v40, %v871_v60 }
 0x1ec   : > { %v903_v37 = vmax.f32 %v901_v24, %v902_v28  ;;  %v891_v52 = vmax.f32 %v889_v18, %v890_v32  ;;  %v865_v48 = vmax.f32 %v863_v41, %v864_v62  ;;  %v886_v12 = vmax.f32 %v884_v43, %v885_v0 }
 0x1ed   : > { %v911_v42 = vrot.slane %v910_v33, 2  ;;  %v899_v2 = vrot.slane %v898_v44, 1  ;;  %v879_v13 = vmax.f32 %v877_v31, %v878_v1 }
 0x1ee   : > { %v904_v45 = vrot.slane %v903_v37, 2  ;;  %v892_v46 = vrot.slane %v891_v52, 1 }
 0x1ef   : > { %v912_v53 = vmax.f32 %v910_v33, %v911_v42  ;;  %v900_v14 = vmax.f32 %v898_v44, %v899_v2 }
 0x1f0   : > { %v905_v50 = vmax.f32 %v903_v37, %v904_v45  ;;  %v893_v16 = vmax.f32 %v891_v52, %v892_v46 }
 0x1f1   : > { %v913_v49 = vrot.slane %v912_v53, 1 }
 0x1f2   : > { %v906_v4 = vrot.slane %v905_v50, 1 }
 0x1f3   : > { %v914_v17 = vmax.f32 %v912_v53, %v913_v49 }
 0x1f4   : > { %v907_v18 = vmax.f32 %v905_v50, %v906_v4 }
 0x1f5   : > { %v1394_v54 = vpop.f32.mrb[16].mxu0 }
 0x1f6   : > { %v1039_v61 = vadd.f32 %v1394_v54, %v1271_v5  ;;  %v1033_v15 = vpop.f32.mrb[17].mxu0 }
 0x1f7   : > { %v1034_v19 = vadd.f32 %v1271_v5, %v1033_v15 }
 0x1f8   : > { %v1051_v20 = vrot.slane %v1039_v61, 1  ;;  %v1052_v21 = vrot.slane %v1039_v61, 2  ;;  %v1053_v22 = vrot.slane %v1039_v61, 3  ;;  %v1054_v23 = vrot.slane %v1039_v61, 4 }
 0x1f9   : > { %v1044_v24 = vrot.slane %v1034_v19, 1  ;;  %v1045_v25 = vrot.slane %v1034_v19, 2  ;;  %v1046_v26 = vrot.slane %v1034_v19, 3  ;;  %v1047_v27 = vrot.slane %v1034_v19, 4 }
 0x1fa   : > { %v1048_v28 = vrot.slane %v1034_v19, 5  ;;  %v1049_v29 = vrot.slane %v1034_v19, 6  ;;  %v1050_v30 = vrot.slane %v1034_v19, 7  ;;  %v1055_v32 = vrot.slane %v1039_v61, 5 }
 0x1fb   : > { %v1056_v33 = vrot.slane %v1039_v61, 6  ;;  %v1057_v34 = vrot.slane %v1039_v61, 7  ;;  %v1074_v35 = vadd.f32 %v1034_v19, %v809_v3  ;;  %v1075_v36 = vadd.f32 %v1044_v24, %v816_v63 }
 0x1fc   : > { %v1076_v37 = vadd.f32 %v1045_v25, %v823_v7  ;;  %v1077_v39 = vadd.f32 %v1046_v26, %v830_v6  ;;  %v1078_v40 = vadd.f32 %v1047_v27, %v837_v9  ;;  %v1079_v41 = vadd.f32 %v1048_v28, %v844_v8 }
 0x1fd   : > { %v1080_v42 = vadd.f32 %v1049_v29, %v851_v10  ;;  %v1081_v43 = vadd.f32 %v1050_v30, %v858_v59  ;;  %v1082_v31 = vadd.f32 %v1039_v61, %v865_v48  ;;  %v1083_v44 = vadd.f32 %v1051_v20, %v872_v11 }
 0x1fe   : > { %v1084_v45 = vadd.f32 %v1052_v21, %v879_v13  ;;  %v1085_v47 = vadd.f32 %v1053_v22, %v886_v12  ;;  %v1086_v51 = vadd.f32 %v1054_v23, %v893_v16  ;;  %v1087_v52 = vadd.f32 %v1055_v32, %v900_v14 }
 0x1ff   : > { %v1088_v53 = vadd.f32 %v1056_v33, %v907_v18  ;;  %v1089_v55 = vadd.f32 %v1057_v34, %v914_v17  ;;  %v1091_v56 = vmax.f32 %v1075_v36, 0.0  ;;  %v1092_v38 = vmax.f32 %v1076_v37, 0.0 }
 0x200   : > { %v1093_v50 = vmax.f32 %v1077_v39, 0.0  ;;  %v1099_v57 = vmax.f32 %v1083_v44, 0.0  ;;  %v1090_v58 = vmax.f32 %v1074_v35, 0.0  ;;  %v1094_v60 = vmax.f32 %v1078_v40, 0.0 }
 0x201   : > { %v1095_v62 = vmax.f32 %v1079_v41, 0.0  ;;  %v1100_v63 = vmax.f32 %v1084_v45, 0.0  ;;  %v1096_v0 = vmax.f32 %v1080_v42, 0.0  ;;  %v1101_v1 = vmax.f32 %v1085_v47, 0.0 }
 0x202   : > { %v1122_v2 = vrot.slane %v1091_v56, 7  ;;  %v1124_v3 = vrot.slane %v1092_v38, 6  ;;  %v1097_v46 = vmax.f32 %v1081_v43, 0.0  ;;  %v1098_v49 = vmax.f32 %v1082_v31, 0.0 }
 0x203   : > { %v1102_v4 = vmax.f32 %v1086_v51, 0.0  ;;  %v1103_v5 = vmax.f32 %v1087_v52, 0.0  ;;  %v1126_v7 = vrot.slane %v1093_v50, 5  ;;  %v1136_v8 = vrot.slane %v1099_v57, 7 }
 0x204   : > { %v1123_v6 = vsel %vm942_vm5, %v1122_v2, %v1090_v58  ;;  %v1138_v9 = vrot.slane %v1100_v63, 6  ;;  %v1104_v59 = vmax.f32 %v1088_v53, 0.0  ;;  %v1105_v10 = vmax.f32 %v1089_v55, 0.0 }
 0x205   : > { %v1125_v11 = vsel %vm944_vm6, %v1124_v3, %v1123_v6  ;;  %v1128_v48 = vrot.slane %v1094_v60, 4  ;;  %v1130_v12 = vrot.slane %v1095_v62, 3  ;;  %v1137_v13 = vsel %vm942_vm5, %v1136_v8, %v1098_v49 }
 0x206   : > { %v1127_v54 = vsel %vm946_vm7, %v1126_v7, %v1125_v11  ;;  %v1140_v14 = vrot.slane %v1101_v1, 5  ;;  %v1132_v15 = vrot.slane %v1096_v0, 2  ;;  %v1139_v16 = vsel %vm944_vm6, %v1138_v9, %v1137_v13 }
 0x207   : > { %v1129_v61 = vsel %vm948_vm8, %v1128_v48, %v1127_v54  ;;  %v1142_v17 = vrot.slane %v1102_v4, 4  ;;  %v1134_v19 = vrot.slane %v1097_v46, 1  ;;  %v1144_v21 = vrot.slane %v1103_v5, 3 }
 0x208   : > { %v1131_v18 = vsel %vm950_vm9, %v1130_v12, %v1129_v61  ;;  %v1141_v20 = vsel %vm946_vm7, %v1140_v14, %v1139_v16  ;;  %v1146_v24 = vrot.slane %v1104_v59, 2  ;;  %v1148_v27 = vrot.slane %v1105_v10, 1 }
 0x209   : > { %v1133_v22 = vsel %vm952_vm10, %v1132_v15, %v1131_v18  ;;  %v1143_v23 = vsel %vm948_vm8, %v1142_v17, %v1141_v20 }
 0x20a   : > { %v1135_v25 = vsel %vm954_vm11, %v1134_v19, %v1133_v22  ;;  %v1145_v26 = vsel %vm950_vm9, %v1144_v21, %v1143_v23 }
 0x20b   : > { %v1147_v28 = vsel %vm952_vm10, %v1146_v24, %v1145_v26  ;;  %1152 = vst.msk [vmem:[%s245_s11] sm:$0xff] %vm802_vm12, %v1135_v25 }
 0x20c   : > { %v1149_v29 = vsel %vm954_vm11, %v1148_v27, %v1147_v28 }
 0x20d   : > { %1153 = vst.msk [vmem:[%s245_s11 + $0x8] sm:$0xff] %vm802_vm12, %v1149_v29 }
 0x20e   : > { %1472 = shalt.err (!%p1469_p3)
}
 0x20f   : > { %s1473_s20 = scalar_lea.hbm %s1813_s14, 256  ;;  %s1477_s29 = scalar_lea.hbm %s1870_s6, 512 }
 0x210   : > { %p1474_p4 = scmp.ne.s32.totalorder %s1813_s14, %s1473_s20  ;;  %p1478_p9 = scmp.lt.u32.totalorder %s1813_s14, %s1870_s6 }
 0x211   : > { %p1479_p10 = scmp.lt.u32.totalorder %s1477_s29, %s1473_s20  ;;  %p1481_p12 = scmp.lt.u32.totalorder %s1473_s20, %s1813_s14 }
 0x212   : > { %p1475_p7 = pnand %p1474_p4, %p1600_p5 }
 0x213   : > { %p1480_p11 = por %p1479_p10, %p1478_p9 }
 0x214   : > { %p1476_p8 = pneg %p1475_p7 }
 0x215   : > { %p1482_p13 = por %p1481_p12, %p1480_p11 }
 0x217   : > { %p1483_p0 = pnand %p1482_p13, %p1476_p8 }
 0x219   : > { %1486 = shalt.err (!%p1483_p0)
}
 0x21a   : > { %s1525_s11 = smov 128   ;;  %s1526_s25 = smov 8  }
 0x21b   : > { %1417 = dma.vmem_to_hbm [thread:$0]  (%p1600_p5), %s1815_s12, 256, %s1813_s14, %s1823_s15, %s1525_s11, %s1525_s11, %s1526_s25  }
 0x21c PF: > { %p1423_p1 = scmp.ge.s32.totalorder %s1521_s24, 2  ;;  %s1183_s13 = sand.u32 1, %s1509_s21  }
 0x21d   : > { %s1184_s16 = scalar_lea.sflag [#allocation3], %s1183_s13 }
 0x21e   : > { %p1420_p2 = pnand %p1423_p1, %p1604_p6 }
 0x220   : > { %1504 = dma.done.wait (!%p1420_p2), %s1184_s16, 256  }
 0x221   : > { %1506 = vsyncadd (!%p1420_p2), %s1184_s16, 4294967040  ;;  %p16_p3 = scmp.ge.s32.totalorder %s1587_s27, 4   ;;  %s1873_s21 = smov %s1513_s22 }
 0x222   : > { %s1874_s22 = smov %s1517_s23  ;;  %s1875_s23 = smov %s1598_s30 }
 0x223   : > { %s1876_s24 = smov %s1587_s27  ;;  %18 = sbr.rel (!%p16_p3) target bundleno = 3 (0x3), region = 79 }
 0x22a   :  { %1189 = vsyncpa [#allocation3], 1 }
 0x22b   :  { %1191 = vsyncpa [#allocation3 + $0x1], 1 }

</bundles_post_ra>
